<compile_context>
chip_gen: v5e
topology: v5e:2x2
jax: 0.10.0
libtpu: 0.0.40
codegen_flags: <defaults>
</compile_context>

<pallas_src>
from functools import partial

import jax
import jax.numpy as jnp
from jax.experimental import pallas as pl
from jax.experimental.pallas import tpu as pltpu

_LANE = 128
# Per-grid-step bytes for (input tile + output tile).  Double-buffered by the
# pipeline this is ~8 MiB -- safely under the scoped-VMEM limit we request and
# well past the tile size where HBM-roofline efficiency plateaus.
_STEP_BUDGET_BYTES = 4 * 1024 * 1024
# Below this per-step size, merge batch elements to amortize step overhead.
_MIN_STEP_BYTES = 512 * 1024


def _choose_blocks(N, C, HWp, in_itemsize, out_itemsize):
    """Pick (batch_block, hw_tile) under the per-step VMEM budget.

    HWp is already a multiple of 128; the returned hw_tile always divides HWp
    so no grid step ever sees a partial (masked-store) tile.
    """
    per_col = C * (in_itemsize + out_itemsize)   # bytes per lane column (in+out)
    slab = per_col * HWp                         # one full batch element (in+out)
    if slab <= _STEP_BUDGET_BYTES:
        if slab >= _MIN_STEP_BYTES:
            return 1, HWp                        # one batch element per step
        # Tiny slabs: merge batch elements into one fat step.
        nb = max(1, min(N, _STEP_BUDGET_BYTES // slab))
        while N % nb:
            nb -= 1
        return nb, HWp
    # Large slab: tile the lane (HW) axis with the largest multiple of 128
    # under budget that divides HWp (128 always divides, so this terminates).
    t = (_STEP_BUDGET_BYTES // per_col) // _LANE * _LANE
    t = max(_LANE, min(t, HWp))
    while HWp % t:
        t -= _LANE
    return 1, t


def _layernorm_kernel(x_ref, g_ref, o_ref, *, eps):
    # x_ref: (nb, C, tHW) block; g_ref: (C, 1) gain (resident across steps).
    x = x_ref[...].astype(jnp.float32)                      # f32 accumulation
    # One-pass moments: E[x] and E[x^2] are independent sublane reductions.
    s1 = jnp.mean(x, axis=1, keepdims=True)                  # (nb, 1, tHW)
    s2 = jnp.mean(x * x, axis=1, keepdims=True)              # (nb, 1, tHW)
    var = jnp.maximum(s2 - s1 * s1, 0.0)                     # guard tiny negatives
    inv = jax.lax.rsqrt(var + eps)                            # EUP rsqrt
    g = g_ref[...].astype(jnp.float32)[None, :, :]            # (1, C, 1), built once
    o_ref[...] = ((x - s1) * inv * g).astype(o_ref.dtype)


def layer_norm(x, g):
    """x: (N, C, H, W), g: (1, C, 1, 1). Returns (N, C, H, W)."""
    N, C, H, W = x.shape
    HW = H * W
    eps = 1e-5 if x.dtype == jnp.float32 else 1e-3

    x3 = x.reshape(N, C, HW)          # contiguous -> free reshape
    g2 = g.reshape(C, 1)

    # Keep the lane axis dense: pad HW up to a multiple of 128.  Padding lanes
    # compute harmless values and are sliced off afterwards.
    hw_pad = (-HW) % _LANE
    if hw_pad:
        x3 = jnp.pad(x3, ((0, 0), (0, 0), (0, hw_pad)))
    HWp = HW + hw_pad

    itemsize = jnp.dtype(x.dtype).itemsize
    nb, thw = _choose_blocks(N, C, HWp, itemsize, itemsize)
    grid = (N // nb, HWp // thw)

    cost = pl.CostEstimate(
        flops=int(7 * N * C * HWp),
        transcendentals=int(N * HWp),
        bytes_accessed=int(2 * N * C * HWp * itemsize + C * itemsize),
    )

    out3 = pl.pallas_call(
        partial(_layernorm_kernel, eps=eps),
        out_shape=jax.ShapeDtypeStruct((N, C, HWp), x.dtype),
        grid_spec=pltpu.PrefetchScalarGridSpec(
            num_scalar_prefetch=0,
            grid=grid,
            in_specs=[
                pl.BlockSpec((nb, C, thw), lambda n, h: (n, 0, h)),
                pl.BlockSpec((C, 1), lambda n, h: (0, 0)),
            ],
            out_specs=pl.BlockSpec((nb, C, thw), lambda n, h: (n, 0, h)),
        ),
        compiler_params=pltpu.CompilerParams(
            dimension_semantics=("parallel", "parallel"),
            vmem_limit_bytes=32 * 1024 * 1024,
        ),
        cost_estimate=cost,
    )(x3, g2)

    if hw_pad:
        out3 = out3[:, :, :HW]
    return out3.reshape(N, C, H, W)


def _reference(x, g):
    eps = 1e-5 if x.dtype == jnp.float32 else 1e-3
    mean = jnp.mean(x, axis=1, keepdims=True)
    var = jnp.mean((x - mean) ** 2, axis=1, keepdims=True)
    return (x - mean) * jax.lax.rsqrt(var + eps) * g


if __name__ == "__main__":
    key = jax.random.PRNGKey(0)
    N, C, H, W = 2, 4, 16, 16
    x = jax.random.normal(key, (N, C, H, W), dtype=jnp.float32)
    # Deterministic parameter init: module sets g = ones(1, dim, 1, 1).
    g = jnp.ones((1, C, 1, 1), dtype=jnp.float32)

    out = jax.block_until_ready(layer_norm(x, g))
    ref = _reference(x, g)

    assert out.shape == (N, C, H, W)
    # Slightly loose tolerance: kernel uses the one-pass E[x^2] - mean^2 form
    # (f32 accumulation) vs. the two-pass centered form in the reference.
    assert jnp.allclose(out, ref, atol=1e-4, rtol=1e-4), "mismatch vs reference"

    print("KERNEL_OK")
</pallas_src>

<mosaic_0001>
module attributes {stable_mosaic.version = 11 : i64} {
  func.func @_layernorm_kernel(%arg0: i32, %arg1: i32, %arg2: memref<2x4x256xf32, #tpu.memory_space<vmem>>, %arg3: memref<4x1xf32, #tpu.memory_space<vmem>>, %arg4: memref<2x4x256xf32, #tpu.memory_space<vmem>>) attributes {dimension_semantics = [#tpu.dimension_semantics<parallel>, #tpu.dimension_semantics<parallel>], iteration_bounds = array<i64: 1, 1>, scalar_prefetch = 0 : i64, scratch_operands = 0 : i64, tpu.core_type = #tpu.core_type<tc>, window_params = [{transform_indices = @transform_0, window_bounds = array<i64: 2, 4, 256>}, {pipeline_mode = #tpu.pipeline_mode<synchronous>, transform_indices = @transform_1, window_bounds = array<i64: 4, 1>}, {transform_indices = @transform_2, window_bounds = array<i64: 2, 4, 256>}]} {
    %c0 = arith.constant 0 : index
    %c0_0 = arith.constant 0 : index
    %c0_1 = arith.constant 0 : index
    %0 = vector.load %arg2[%c0, %c0_0, %c0_1] : memref<2x4x256xf32, #tpu.memory_space<vmem>>, vector<2x4x256xf32>
    %cst = arith.constant dense<0.000000e+00> : vector<2x256xf32>
    %1 = vector.multi_reduction <add>, %0, %cst [1] : vector<2x4x256xf32> to vector<2x256xf32>
    %2 = vector.shape_cast %1 : vector<2x256xf32> to vector<2x1x256xf32>
    %cst_2 = arith.constant 4.000000e+00 : f32
    %3 = vector.broadcast %cst_2 : f32 to vector<2x1x256xf32>
    %4 = arith.divf %2, %3 : vector<2x1x256xf32>
    %5 = arith.mulf %0, %0 : vector<2x4x256xf32>
    %cst_3 = arith.constant dense<0.000000e+00> : vector<2x256xf32>
    %6 = vector.multi_reduction <add>, %5, %cst_3 [1] : vector<2x4x256xf32> to vector<2x256xf32>
    %7 = vector.shape_cast %6 : vector<2x256xf32> to vector<2x1x256xf32>
    %cst_4 = arith.constant 4.000000e+00 : f32
    %8 = vector.broadcast %cst_4 : f32 to vector<2x1x256xf32>
    %9 = arith.divf %7, %8 : vector<2x1x256xf32>
    %10 = arith.mulf %4, %4 : vector<2x1x256xf32>
    %11 = arith.subf %9, %10 : vector<2x1x256xf32>
    %cst_5 = arith.constant 0.000000e+00 : f32
    %12 = vector.broadcast %cst_5 : f32 to vector<2x1x256xf32>
    %13 = arith.maximumf %11, %12 : vector<2x1x256xf32>
    %cst_6 = arith.constant 9.99999974E-6 : f32
    %14 = vector.broadcast %cst_6 : f32 to vector<2x1x256xf32>
    %15 = arith.addf %13, %14 : vector<2x1x256xf32>
    %16 = math.rsqrt %15 : vector<2x1x256xf32>
    %c0_7 = arith.constant 0 : index
    %c0_8 = arith.constant 0 : index
    %17 = vector.load %arg3[%c0_7, %c0_8] : memref<4x1xf32, #tpu.memory_space<vmem>>, vector<4x1xf32>
    %18 = vector.shape_cast %17 : vector<4x1xf32> to vector<1x4x1xf32>
    %19 = vector.broadcast %4 : vector<2x1x256xf32> to vector<2x4x256xf32>
    %20 = arith.subf %0, %19 : vector<2x4x256xf32>
    %21 = vector.broadcast %16 : vector<2x1x256xf32> to vector<2x4x256xf32>
    %22 = arith.mulf %20, %21 : vector<2x4x256xf32>
    %23 = vector.broadcast %18 : vector<1x4x1xf32> to vector<2x4x256xf32>
    %24 = arith.mulf %22, %23 : vector<2x4x256xf32>
    %c0_9 = arith.constant 0 : index
    %c0_10 = arith.constant 0 : index
    %c0_11 = arith.constant 0 : index
    %25 = vector.load %arg4[%c0_9, %c0_10, %c0_11] : memref<2x4x256xf32, #tpu.memory_space<vmem>>, vector<2x4x256xf32>
    tpu.vector_store %arg4[%c0_9, %c0_10, %c0_11], %24 {strides = array<i32>} : memref<2x4x256xf32, #tpu.memory_space<vmem>>, vector<2x4x256xf32>,
    return
  }
  func.func @transform_0(%arg0: i32, %arg1: i32) -> (i32, i32, i32) {
    %c0_i32 = arith.constant 0 : i32
    %c0_i32_0 = arith.constant 0 : i32
    return %arg0, %c0_i32, %arg1 : i32, i32, i32
  }
  func.func @transform_1(%arg0: i32, %arg1: i32) -> (i32, i32) {
    %c0_i32 = arith.constant 0 : i32
    %c0_i32_0 = arith.constant 0 : i32
    %c0_i32_1 = arith.constant 0 : i32
    return %c0_i32, %c0_i32_0 : i32, i32
  }
  func.func @transform_2(%arg0: i32, %arg1: i32) -> (i32, i32, i32) {
    %c0_i32 = arith.constant 0 : i32
    %c0_i32_0 = arith.constant 0 : i32
    return %arg0, %c0_i32, %arg1 : i32, i32, i32
  }
}

</mosaic_0001>

<bundles_post_ra>
// kernel: tpu_custom_call.1
= control target key start
LH: loop header
LB: loop body
LE: loop exit
PB: predicated region body
PF: predicated region fallthrough
CT: control target
= control target key end

     0   :  { %7 = vsyncpa [#allocation3], 0  ;;  %s406_s0 = inlined_call_operand.hbm [shape: f32[2,4,256], index: 0, kind: input, shape index: {}]   ;;  %s407_s1 = inlined_call_operand.vmem [shape: f32[4,1], index: 1, kind: input, shape index: {}]   ;;  %s408_s2 = inlined_call_operand.hbm [shape: f32[2,4,256], index: 2, kind: output, shape index: {}]  }
   0x1   :  { %8 = vsyncpa [#allocation4], 0  ;;  %s13_s11 = sshll.u32 %s406_s0, 4  ;;  %s313_s12 = smov [#allocation2]   ;;  %s14_s11 = int_to_ptr.hbm [resolvable:$true] %s13_s11 }
   0x2   :  { %s15_s13 = sshll.u32 %s313_s12, 4  ;;  %s314_s14 = smov 128   ;;  %s16_s13 = int_to_ptr.vmem [resolvable:$true] %s15_s13 }
   0x3   :  { %s315_s15 = smov 8  }
   0x4   :  { %21 = dma.hbm_to_vmem [thread:$0]  %s14_s11, 256, %s16_s13, [#allocation3], %s314_s14, %s314_s14, %s315_s15  }
   0x5   :  { %309 = dma.done.wait [#allocation3], 256  }
   0x6   :  { %310 = vsyncadd [#allocation3], 4294967040  ;;  %v316_v0 = vmov 0   ;;  %v186_v1 = vld [vmem:[%s407_s1] sm:$0xf]  ;;  %v317_v2 = vmov 4.0  }
   0x7   :  { %250 = vset.pattern.permute.xlu0 %v316_v0  ;;  %251 = vrcp.f32 %v317_v2  ;;  %v344_v4 = vld [vmem:[#allocation2] sm:$0xff]  ;;  %v346_v5 = vld [vmem:[#allocation2 + $0x8] sm:$0xff]  ;;  %vm43_vm0 = vcmask 1043456   ;;  %s319_s0 = smov [#allocation5]   ;;  %s230_s20 = sshll.u32 %s408_s2, 4  ;;  %s231_s20 = int_to_ptr.hbm [resolvable:$true] %s230_s20 }
   0x8   :  { %213 = vperm.xlu0 %250, %v186_v1   ;;  %32 = vst [vmem:[#allocation1] ss:$2 sm:$0xff] %v344_v4  ;;  %v83_v8 = vmul.f32 %v344_v4, %v344_v4  ;;  %v84_v9 = vmul.f32 %v346_v5, %v346_v5  ;;  %s228_s1 = sshll.u32 %s319_s0, 4  ;;  %s229_s1 = int_to_ptr.vmem [resolvable:$true] %s228_s1 }
   0x9   :  { %36 = vst [vmem:[#allocation1 + $0x10] ss:$2 sm:$0xff] %v346_v5 }
   0xd   :  { %v252_v3 = vpop.eup %251 }
   0xe   :  { %v73_v6 = vmul.f32 4.0, %v252_v3  ;;  %vm77_vm1 = vweird.f32 %v252_v3 }
   0xf   :  { %v33_v10 = vld.sshfl [vmem:[#allocation1] sm:$0xff pattern:$0x75316420]  ;;  %v34_v11 = vld.sshfl [vmem:[#allocation1 + $0x8] sm:$0xff pattern:$0x75316420] }
  0x10   :  { %v74_v7 = vsub.f32 1.0, %v73_v6  ;;  %v37_v12 = vld.sshfl [vmem:[#allocation1 + $0x10] sm:$0xff pattern:$0x75316420]  ;;  %87 = vst [vmem:[#allocation1] ss:$2 sm:$0xff] %v83_v8 }
  0x11   :  { %v38_v13 = vld.sshfl [vmem:[#allocation1 + $0x18] sm:$0xff pattern:$0x75316420]  ;;  %v51_v16 = vsel %vm43_vm0, %v34_v11, 0.0  ;;  %v44_v20 = vsel %vm43_vm0, %v33_v10, 0.0  ;;  %v58_v21 = vsel %vm43_vm0, %v37_v12, 0.0 }
  0x12   :  { %v75_v14 = vmul.f32 %v252_v3, %v74_v7  ;;  %91 = vst [vmem:[#allocation1 + $0x10] ss:$2 sm:$0xff] %v84_v9  ;;  %v65_v17 = vsel %vm43_vm0, %v38_v13, 0.0  ;;  %v52_v18 = vrot.slane %v51_v16, 4  ;;  %v45_v23 = vrot.slane %v44_v20, 4 }
  0x13   :  { %v66_v19 = vrot.slane %v65_v17, 4  ;;  %v59_v25 = vrot.slane %v58_v21, 4 }
  0x14   :  { %v76_v15 = vadd.f32 %v252_v3, %v75_v14  ;;  %v53_v24 = vadd.f32 %v52_v18, %v51_v16  ;;  %v46_v31 = vadd.f32 %v45_v23, %v44_v20 }
  0x15   :  { %v67_v26 = vadd.f32 %v66_v19, %v65_v17  ;;  %v60_v33 = vadd.f32 %v59_v25, %v58_v21 }
  0x16   :  { %v78_v28 = vsel %vm77_vm1, %v252_v3, %v76_v15  ;;  %v54_v32 = vrot.slane %v53_v24, 2  ;;  %v47_v39 = vrot.slane %v46_v31, 2 }
  0x17   :  { %v89_v22 = vld.sshfl [vmem:[#allocation1 + $0x8] sm:$0xff pattern:$0x75316420]  ;;  %v88_v27 = vld.sshfl [vmem:[#allocation1] sm:$0xff pattern:$0x75316420] }
  0x18   :  { %v68_v34 = vrot.slane %v67_v26, 2  ;;  %v98_v35 = vsel %vm43_vm0, %v88_v27, 0.0  ;;  %v105_v36 = vsel %vm43_vm0, %v89_v22, 0.0  ;;  %v55_v40 = vadd.f32 %v54_v32, %v53_v24 }
  0x19   :  { %v92_v29 = vld.sshfl [vmem:[#allocation1 + $0x10] sm:$0xff pattern:$0x75316420]  ;;  %v93_v30 = vld.sshfl [vmem:[#allocation1 + $0x18] sm:$0xff pattern:$0x75316420]  ;;  %v48_v47 = vadd.f32 %v47_v39, %v46_v31 }
  0x1a   :  { %v112_v37 = vsel %vm43_vm0, %v92_v29, 0.0  ;;  %v119_v38 = vsel %vm43_vm0, %v93_v30, 0.0  ;;  %v61_v41 = vrot.slane %v60_v33, 2  ;;  %v69_v42 = vadd.f32 %v68_v34, %v67_v26 }
  0x1b   :  { %v99_v43 = vrot.slane %v98_v35, 4  ;;  %v106_v44 = vrot.slane %v105_v36, 4  ;;  %v113_v45 = vrot.slane %v112_v37, 4  ;;  %v120_v46 = vrot.slane %v119_v38, 4 }
  0x1c   :  { %v56_v48 = vrot.slane %v55_v40, 1  ;;  %v62_v49 = vadd.f32 %v61_v41, %v60_v33  ;;  %v70_v50 = vrot.slane %v69_v42, 1  ;;  %v49_v55 = vrot.slane %v48_v47, 1 }
  0x1d   :  { %v100_v51 = vadd.f32 %v99_v43, %v98_v35  ;;  %v107_v52 = vadd.f32 %v106_v44, %v105_v36  ;;  %v114_v53 = vadd.f32 %v113_v45, %v112_v37  ;;  %v121_v54 = vadd.f32 %v120_v46, %v119_v38 }
  0x1e   :  { %v57_v56 = vadd.f32 %v56_v48, %v55_v40  ;;  %v63_v57 = vrot.slane %v62_v49, 1  ;;  %v71_v58 = vadd.f32 %v70_v50, %v69_v42  ;;  %v50_v63 = vadd.f32 %v49_v55, %v48_v47 }
  0x1f   :  { %v101_v59 = vrot.slane %v100_v51, 2  ;;  %v108_v60 = vrot.slane %v107_v52, 2  ;;  %v115_v61 = vrot.slane %v114_v53, 2  ;;  %v122_v62 = vrot.slane %v121_v54, 2 }
  0x20   :  { %v362_v0 = vmul.f32 %v78_v28, %v57_v56  ;;  %v64_v7 = vadd.f32 %v63_v57, %v62_v49  ;;  %v364_v8 = vmul.f32 %v78_v28, %v71_v58  ;;  %v366_v13 = vmul.f32 %v78_v28, %v50_v63 }
  0x21   :  { %v102_v1 = vadd.f32 %v101_v59, %v100_v51  ;;  %v109_v2 = vadd.f32 %v108_v60, %v107_v52  ;;  %v116_v3 = vadd.f32 %v115_v61, %v114_v53  ;;  %v123_v6 = vadd.f32 %v122_v62, %v121_v54 }
  0x22   :  { %v131_v17 = vmul.f32 %v362_v0, %v362_v0  ;;  %v370_v18 = vmul.f32 %v78_v28, %v64_v7  ;;  %v133_v20 = vmul.f32 %v364_v8, %v364_v8  ;;  %v130_v24 = vmul.f32 %v366_v13, %v366_v13 }
  0x23   :  { %v103_v9 = vrot.slane %v102_v1, 1  ;;  %v110_v10 = vrot.slane %v109_v2, 1  ;;  %v117_v11 = vrot.slane %v116_v3, 1  ;;  %v124_v12 = vrot.slane %v123_v6, 1 }
  0x24   :  { %v132_v27 = vmul.f32 %v370_v18, %v370_v18  ;;  %v191_v62 = vrot.slane %v362_v0, 4  ;;  %v192_v63 = vrot.slane %v364_v8, 4  ;;  %v318_v8 = vmov 839922192  }
  0x25   :  { %v104_v14 = vadd.f32 %v103_v9, %v102_v1  ;;  %v111_v15 = vadd.f32 %v110_v10, %v109_v2  ;;  %v125_v16 = vadd.f32 %v124_v12, %v123_v6  ;;  %v118_v19 = vadd.f32 %v117_v11, %v116_v3 }
  0x26   :  { %v193_v9 = vsel %vm43_vm0, %v366_v13, %v191_v62  ;;  %v194_v10 = vsel %vm43_vm0, %v370_v18, %v192_v63  ;;  %v216_v12 = vunpack.c.l.s4 %v318_v8 }
  0x27   :  { %v127_v21 = vmul.f32 %v111_v15, %v78_v28  ;;  %v129_v22 = vmul.f32 %v125_v16, %v78_v28  ;;  %v126_v23 = vmul.f32 %v104_v14, %v78_v28  ;;  %v128_v26 = vmul.f32 %v118_v19, %v78_v28 }
  0x28   :  { %v197_v16 = vsub.f32 %v344_v4, %v193_v9  ;;  %v217_v13 = vunpack.c.0.s8 %v216_v12 }
  0x29   :  { %v135_v25 = vsub.f32 %v127_v21, %v131_v17  ;;  %v137_v29 = vsub.f32 %v129_v22, %v133_v20  ;;  %v134_v30 = vsub.f32 %v126_v23, %v130_v24  ;;  %v136_v32 = vsub.f32 %v128_v26, %v132_v27 }
  0x2a   :  { %v198_v17 = vsub.f32 %v346_v5, %v194_v10 }
  0x2b   :  { %v139_v31 = vmax.f32 %v135_v25, 0.0  ;;  %v141_v33 = vmax.f32 %v137_v29, 0.0  ;;  %v138_v34 = vmax.f32 %v134_v30, 0.0  ;;  %v140_v36 = vmax.f32 %v136_v32, 0.0 }
  0x2d   :  { %v143_v35 = vadd.f32 1e-05, %v139_v31  ;;  %v145_v37 = vadd.f32 1e-05, %v141_v33  ;;  %v142_v38 = vadd.f32 1e-05, %v138_v34 }
  0x2e   :  { %v144_v39 = vadd.f32 1e-05, %v140_v36 }
  0x2f   :  { %253 = vrsqrt.f32 %v143_v35  ;;  %vm162_vm2 = vweird.f32 %v143_v35  ;;  %vm182_vm4 = vweird.f32 %v145_v37  ;;  %vm152_vm7 = vweird.f32 %v142_v38 }
  0x30   :  { %255 = vrsqrt.f32 %v145_v37  ;;  %vm172_vm10 = vweird.f32 %v144_v39 }
  0x31   :  { %257 = vrsqrt.f32 %v142_v38 }
  0x32   :  { %259 = vrsqrt.f32 %v144_v39 }
  0x35   :  { %v254_v40 = vpop.eup %253 }
  0x36   :  { %v256_v28 = vpop.eup %255  ;;  %v157_v42 = vmul.f32 %v254_v40, %v143_v35  ;;  %vm163_vm3 = vweird.f32 %v254_v40 }
  0x37   :  { %v258_v41 = vpop.eup %257  ;;  %v177_v43 = vmul.f32 %v256_v28, %v145_v37  ;;  %vm183_vm5 = vweird.f32 %v256_v28  ;;  %vm378_vm6 = vmor %vm162_vm2, %vm163_vm3 }
  0x38   :  { %v260_v44 = vpop.eup %259  ;;  %v147_v45 = vmul.f32 %v258_v41, %v142_v38  ;;  %v158_v46 = vmul.f32 %v254_v40, %v157_v42  ;;  %vm153_vm8 = vweird.f32 %v258_v41  ;;  %vm184_vm9 = vmor %vm182_vm4, %vm183_vm5 }
  0x39   :  { %v167_v47 = vmul.f32 %v260_v44, %v144_v39  ;;  %v178_v48 = vmul.f32 %v256_v28, %v177_v43  ;;  %vm173_vm11 = vweird.f32 %v260_v44  ;;  %vm384_vm12 = vmor %vm152_vm7, %vm153_vm8 }
  0x3a   :  { %v148_v49 = vmul.f32 %v258_v41, %v147_v45  ;;  %v159_v50 = vmul.f32 0.5, %v158_v46  ;;  %vm174_vm13 = vmor %vm172_vm10, %vm173_vm11 }
  0x3b   :  { %v168_v51 = vmul.f32 %v260_v44, %v167_v47  ;;  %v179_v52 = vmul.f32 0.5, %v178_v48 }
  0x3c   :  { %v149_v53 = vmul.f32 0.5, %v148_v49  ;;  %v160_v54 = vsub.f32 1.5, %v159_v50 }
  0x3d   :  { %v169_v55 = vmul.f32 0.5, %v168_v51  ;;  %v180_v56 = vsub.f32 1.5, %v179_v52 }
  0x3e   :  { %v150_v57 = vsub.f32 1.5, %v149_v53  ;;  %v161_v58 = vmul.f32 %v254_v40, %v160_v54 }
  0x3f   :  { %v170_v60 = vsub.f32 1.5, %v169_v55  ;;  %v181_v61 = vmul.f32 %v256_v28, %v180_v56 }
  0x40   :  { %v151_v1 = vmul.f32 %v258_v41, %v150_v57  ;;  %v165_v3 = vsel %vm378_vm6, %v254_v40, %v161_v58 }
  0x41   :  { %v171_v6 = vmul.f32 %v260_v44, %v170_v60  ;;  %v185_v7 = vsel %vm184_vm9, %v256_v28, %v181_v61  ;;  %v203_v0 = vrot.slane %v165_v3, 4 }
  0x42   :  { %v204_v11 = vrot.slane %v185_v7, 4  ;;  %v155_v14 = vsel %vm384_vm12, %v258_v41, %v151_v1 }
  0x43   :  { %v175_v15 = vsel %vm174_vm13, %v260_v44, %v171_v6  ;;  %v205_v19 = vsel %vm43_vm0, %v155_v14, %v203_v0 }
  0x44   :  { %v206_v20 = vsel %vm43_vm0, %v175_v15, %v204_v11  ;;  %v209_v21 = vmul.f32 %v205_v19, %v197_v16 }
  0x45   :  { %v210_v22 = vmul.f32 %v206_v20, %v198_v17 }
  0x7a   :  { %v214_v18 = vpop.permute.xlu0 %213 }
  0x7b   :  { %v218_v23 = vperm.slane %v214_v18, %v217_v13 }
  0x7d   :  { %v220_v24 = vmul.f32 %v218_v23, %v209_v21  ;;  %v221_v25 = vmul.f32 %v218_v23, %v210_v22 }
  0x7f   :  { %222 = vst [vmem:[#allocation5] sm:$0xff] %v220_v24 }
  0x80   :  { %223 = vst [vmem:[#allocation5 + $0x8] sm:$0xff] %v221_v25 }
  0x81   :  { %236 = dma.vmem_to_hbm [thread:$0]  %s229_s1, 256, %s231_s20, [#allocation4], %s314_s14, %s314_s14, %s315_s15  }
  0x82   :  { %311 = dma.done.wait [#allocation4], 256  }
  0x83   :  { %312 = vsyncadd [#allocation4], 4294967040 }
  0x84   :  { %241 = vsyncpa [#allocation3], 1 }
  0x85   :  { %242 = vsyncpa [#allocation4], 1 }

</bundles_post_ra>
